<compile_context>
chip_gen: v7x
topology: tpu7x:2x2x1
jax: 0.10.0
libtpu: 0.0.40
codegen_flags: <defaults>
</compile_context>

<pallas_src>
import jax
import jax.numpy as jnp
from jax.experimental import pallas as pl
from jax.experimental.pallas import tpu as pltpu

_LANE = 128


def _round_up(n, m):
    return ((n + m - 1) // m) * m


def _cdiv(a, b):
    return -(-a // b)


def _vmem_ceiling_bytes():
    """Per-generation VMEM ceiling: physical capacity minus ~8 MiB headroom."""
    try:
        cap = int(pltpu.get_tpu_info().vmem_capacity_bytes)
    except Exception:
        cap = 64 * 1024 * 1024          # conservative (v7x-sized) fallback
    return max(cap - (8 << 20), 16 << 20)


def _mlp_kernel(x_ref, w1_ref, b1_ref, w2_ref, b2_ref, w3_ref, b3_ref,
                o_ref, h1_ref, h2_ref):
    tm = x_ref.shape[0]
    # Split the batch tile into 2 independent row sub-chunks (when sublane-packing
    # allows) so one chunk's bias+ReLU/store epilogue hides under the other's matmul.
    pack = 8 * max(1, 4 // jnp.dtype(x_ref.dtype).itemsize)   # f32: 8, bf16: 16
    n_chunks = 2 if (tm % (2 * pack) == 0) else 1
    rows = tm // n_chunks

    # Resident (single-buffered) weights/biases; biases stay f32.
    w1 = w1_ref[...]
    w2 = w2_ref[...]
    w3 = w3_ref[...]
    b1 = b1_ref[...]
    b2 = b2_ref[...]
    b3 = b3_ref[...]

    for c in range(n_chunks):                     # static, unrolled
        r = pl.ds(c * rows, rows)

        # layer 1: linear + relu  (dropout = identity in eval mode)
        h1 = jnp.dot(x_ref[r, :], w1, preferred_element_type=jnp.float32)
        h1_ref[r, :] = jnp.maximum(h1 + b1, 0.0).astype(h1_ref.dtype)

        # layer 2: linear + relu  (dropout = identity in eval mode)
        h2 = jnp.dot(h1_ref[r, :], w2, preferred_element_type=jnp.float32)
        h2_ref[r, :] = jnp.maximum(h2 + b2, 0.0).astype(h2_ref.dtype)

        # layer 3: linear (logits) — lane-dense (128-multiple) store.
        out = jnp.dot(h2_ref[r, :], w3, preferred_element_type=jnp.float32)
        o_ref[r, :] = (out + b3).astype(o_ref.dtype)


class ThreeLayerMLPPallas:
    """Fused eval-mode ThreeLayerMLP. Parameters are padded/cast once at init."""

    def __init__(self, w1, b1, w2, b2, w3, b3, *, compute_dtype=jnp.float32):
        cdt = jnp.dtype(compute_dtype)
        w1, w2, w3 = (jnp.asarray(w) for w in (w1, w2, w3))
        self.D_in, self.H1 = w1.shape
        self.H2, self.D_out = w2.shape[1], w3.shape[1]
        self.Dp, self.H1p, self.H2p, self.Dop = (
            _round_up(d, _LANE) for d in (self.D_in, self.H1, self.H2, self.D_out))
        self.cdt = cdt

        def pad2(a, rows, cols, dtype):
            a = jnp.asarray(a, dtype).reshape(-1, a.shape[-1]) if a.ndim == 2 \
                else jnp.asarray(a, dtype).reshape(1, -1)
            return jnp.pad(a, ((0, rows - a.shape[0]), (0, cols - a.shape[1])))

        # Zero padding is exact: padded units have zero weights/bias, relu(0)=0.
        # Padded once here (NOT per forward call).
        self.w1 = pad2(w1, self.Dp, self.H1p, cdt)
        self.w2 = pad2(w2, self.H1p, self.H2p, cdt)
        self.w3 = pad2(w3, self.H2p, self.Dop, cdt)
        # Biases stay f32: the bias add happens on the f32 accumulator.
        self.b1 = pad2(jnp.reshape(jnp.asarray(b1), (1, -1)), 1, self.H1p, jnp.float32)
        self.b2 = pad2(jnp.reshape(jnp.asarray(b2), (1, -1)), 1, self.H2p, jnp.float32)
        self.b3 = pad2(jnp.reshape(jnp.asarray(b3), (1, -1)), 1, self.Dop, jnp.float32)

    # ---- tiling -------------------------------------------------------------
    def _default_tm(self, B, sub, isz, osz):
        B_al = _round_up(B, sub)
        # Per-row VMEM of the streamed tiles (double-buffered x/out) + scratch.
        row_bytes = 2 * self.Dp * isz + 2 * self.Dop * osz + (self.H1p + self.H2p) * isz
        budget = 24 << 20                                   # tile budget (weights extra)
        cap = max(sub, min(1024, (budget // row_bytes) // sub * sub))
        # >= 2 grid steps whenever the batch allows, so v7x's two TCs both get work.
        min_steps = 2 if B_al >= 2 * sub else 1
        steps = max(min_steps, _cdiv(B_al, cap))
        return _round_up(_cdiv(B_al, steps), sub)

    # ---- forward ------------------------------------------------------------
    def __call__(self, x, *, tm=None, training=False):
        if training:
            # TODO(synk): training-mode stochastic dropout not implemented.
            raise NotImplementedError("ThreeLayerMLP Pallas kernel is eval-mode only")

        B, D_in = x.shape
        assert D_in == self.D_in, (D_in, self.D_in)
        cdt = self.cdt
        out_dtype = x.dtype
        isz = cdt.itemsize
        osz = jnp.dtype(out_dtype).itemsize
        Dp, H1p, H2p, Dop = self.Dp, self.H1p, self.H2p, self.Dop

        sub = 8 * max(1, 4 // isz)                # sublane packing: f32 8, bf16 16
        if tm is None:
            tm = self._default_tm(B, sub, isz, osz)
        Bp = _round_up(B, tm)
        grid = (Bp // tm,)

        # Only x is padded per call (weights were padded once in __init__).
        xp = jnp.pad(x.astype(cdt), ((0, Bp - B), (0, Dp - D_in)))

        # --- VMEM budget: 1x resident weights + double-buffered act tiles + scratch.
        weight_bytes = (Dp * H1p + H1p * H2p + H2p * Dop) * isz + (H1p + H2p + Dop) * 4
        act_bytes = 2 * tm * Dp * isz + 2 * tm * Dop * osz
        scratch_bytes = tm * (H1p + H2p) * isz
        need = weight_bytes + act_bytes + scratch_bytes
        vmem_limit = int(min(need + (4 << 20), _vmem_ceiling_bytes()))

        flops = 2 * Bp * (Dp * H1p + H1p * H2p + H2p * Dop)
        bytes_accessed = Bp * Dp * isz + weight_bytes + Bp * Dop * osz

        out_padded = pl.pallas_call(
            _mlp_kernel,
            out_shape=jax.ShapeDtypeStruct((Bp, Dop), out_dtype),
            grid_spec=pltpu.PrefetchScalarGridSpec(
                num_scalar_prefetch=0,
                grid=grid,
                in_specs=[
                    # x streams over the batch axis (double-buffered blocks).
                    pl.BlockSpec((tm, Dp), lambda i: (i, 0)),
                    # Weights/biases: whole-array, single-buffered, resident in VMEM.
                    pl.BlockSpec(memory_space=pltpu.MemorySpace.VMEM),
                    pl.BlockSpec(memory_space=pltpu.MemorySpace.VMEM),
                    pl.BlockSpec(memory_space=pltpu.MemorySpace.VMEM),
                    pl.BlockSpec(memory_space=pltpu.MemorySpace.VMEM),
                    pl.BlockSpec(memory_space=pltpu.MemorySpace.VMEM),
                    pl.BlockSpec(memory_space=pltpu.MemorySpace.VMEM),
                ],
                out_specs=pl.BlockSpec((tm, Dop), lambda i: (i, 0)),
                scratch_shapes=[
                    pltpu.VMEM((tm, H1p), cdt),           # h1 staging (compute dtype)
                    pltpu.VMEM((tm, H2p), cdt),           # h2 staging (compute dtype)
                ],
            ),
            compiler_params=pltpu.CompilerParams(
                dimension_semantics=("parallel",),        # v7x: 2 TCs split the batch
                vmem_limit_bytes=vmem_limit,
            ),
            cost_estimate=pl.CostEstimate(
                flops=int(flops), transcendentals=0,
                bytes_accessed=int(bytes_accessed)),
        )(xp, self.w1, self.b1, self.w2, self.b2, self.w3, self.b3)

        return out_padded[:B, :self.D_out]


def init_params(key, d_in, h1, h2, d_out):
    """Deterministic PyTorch-style (Kaiming-uniform-ish) init, stored as (in, out)."""
    ks = jax.random.split(key, 6)

    def linear(kw, kb, fan_in, fan_out):
        bound = 1.0 / jnp.sqrt(jnp.float32(fan_in))
        w = jax.random.uniform(kw, (fan_in, fan_out), jnp.float32, -bound, bound)
        b = jax.random.uniform(kb, (1, fan_out), jnp.float32, -bound, bound)
        return w, b

    w1, b1 = linear(ks[0], ks[1], d_in, h1)
    w2, b2 = linear(ks[2], ks[3], h1, h2)
    w3, b3 = linear(ks[4], ks[5], h2, d_out)
    return w1, b1, w2, b2, w3, b3


if __name__ == "__main__":
    B, D_in, H1, H2, D_out = 8, 32, 64, 32, 16

    key = jax.random.PRNGKey(0)
    kx, kp = jax.random.split(key)
    x = jax.random.normal(kx, (B, D_in), jnp.float32)
    w1, b1, w2, b2, w3, b3 = init_params(kp, D_in, H1, H2, D_out)

    # Pure-JAX reference of the same forward pass (eval-mode dropout = identity).
    ref = jnp.maximum(x @ w1 + b1, 0.0)
    ref = jnp.maximum(ref @ w2 + b2, 0.0)
    ref = ref @ w3 + b3

    # f32 path: exact check.
    mlp_f32 = ThreeLayerMLPPallas(w1, b1, w2, b2, w3, b3, compute_dtype=jnp.float32)
    out_f32 = jax.block_until_ready(mlp_f32(x))
    assert out_f32.shape == (B, D_out)
    assert jnp.allclose(out_f32, ref, atol=1e-5, rtol=1e-5)

    # bf16-operand / f32-accumulation path (v6e/v7x MXU + bandwidth win).
    mlp_bf16 = ThreeLayerMLPPallas(w1, b1, w2, b2, w3, b3, compute_dtype=jnp.bfloat16)
    out_bf16 = jax.block_until_ready(mlp_bf16(x))
    assert out_bf16.shape == (B, D_out)
    assert jnp.allclose(out_bf16.astype(jnp.float32), ref, atol=5e-2, rtol=5e-2)

    print("KERNEL_OK")
</pallas_src>

<mosaic_0001>
module attributes {stable_mosaic.version = 11 : i64} {
  func.func @_mlp_kernel(%arg0: i32, %arg1: memref<8x128xf32, #tpu.memory_space<vmem>>, %arg2: memref<128x128xf32, #tpu.memory_space<vmem>>, %arg3: memref<1x128xf32, #tpu.memory_space<vmem>>, %arg4: memref<128x128xf32, #tpu.memory_space<vmem>>, %arg5: memref<1x128xf32, #tpu.memory_space<vmem>>, %arg6: memref<128x128xf32, #tpu.memory_space<vmem>>, %arg7: memref<1x128xf32, #tpu.memory_space<vmem>>, %arg8: memref<8x128xf32, #tpu.memory_space<vmem>>, %arg9: memref<8x128xf32, #tpu.memory_space<vmem>>, %arg10: memref<8x128xf32, #tpu.memory_space<vmem>>) attributes {dimension_semantics = [#tpu.dimension_semantics<parallel>], iteration_bounds = array<i64: 1>, scalar_prefetch = 0 : i64, scratch_operands = 2 : i64, tpu.core_type = #tpu.core_type<tc>, window_params = [{transform_indices = @transform_0, window_bounds = array<i64: 8, 128>}, {pipeline_mode = #tpu.pipeline_mode<synchronous>, transform_indices = @transform_1, window_bounds = array<i64: 128, 128>}, {pipeline_mode = #tpu.pipeline_mode<synchronous>, transform_indices = @transform_2, window_bounds = array<i64: 1, 128>}, {pipeline_mode = #tpu.pipeline_mode<synchronous>, transform_indices = @transform_3, window_bounds = array<i64: 128, 128>}, {pipeline_mode = #tpu.pipeline_mode<synchronous>, transform_indices = @transform_4, window_bounds = array<i64: 1, 128>}, {pipeline_mode = #tpu.pipeline_mode<synchronous>, transform_indices = @transform_5, window_bounds = array<i64: 128, 128>}, {pipeline_mode = #tpu.pipeline_mode<synchronous>, transform_indices = @transform_6, window_bounds = array<i64: 1, 128>}, {transform_indices = @transform_7, window_bounds = array<i64: 8, 128>}]} {
    %c0 = arith.constant 0 : index
    %c0_0 = arith.constant 0 : index
    %0 = vector.load %arg2[%c0, %c0_0] : memref<128x128xf32, #tpu.memory_space<vmem>>, vector<128x128xf32>
    %c0_1 = arith.constant 0 : index
    %c0_2 = arith.constant 0 : index
    %1 = vector.load %arg4[%c0_1, %c0_2] : memref<128x128xf32, #tpu.memory_space<vmem>>, vector<128x128xf32>
    %c0_3 = arith.constant 0 : index
    %c0_4 = arith.constant 0 : index
    %2 = vector.load %arg6[%c0_3, %c0_4] : memref<128x128xf32, #tpu.memory_space<vmem>>, vector<128x128xf32>
    %c0_5 = arith.constant 0 : index
    %c0_6 = arith.constant 0 : index
    %3 = vector.load %arg3[%c0_5, %c0_6] : memref<1x128xf32, #tpu.memory_space<vmem>>, vector<1x128xf32>
    %c0_7 = arith.constant 0 : index
    %c0_8 = arith.constant 0 : index
    %4 = vector.load %arg5[%c0_7, %c0_8] : memref<1x128xf32, #tpu.memory_space<vmem>>, vector<1x128xf32>
    %c0_9 = arith.constant 0 : index
    %c0_10 = arith.constant 0 : index
    %5 = vector.load %arg7[%c0_9, %c0_10] : memref<1x128xf32, #tpu.memory_space<vmem>>, vector<1x128xf32>
    %c0_11 = arith.constant 0 : index
    %c0_12 = arith.constant 0 : index
    %6 = vector.load %arg1[%c0_11, %c0_12] : memref<8x128xf32, #tpu.memory_space<vmem>>, vector<8x128xf32>
    %cst = arith.constant dense<0.000000e+00> : vector<8x128xf32>
    %7 = tpu.matmul %6, %0, %cst {dimension_numbers = #tpu.dot_dimension_numbers<[1], [0], [0], [1], [0, 0, 1, 1], [], []>} : vector<8x128xf32>, vector<128x128xf32>, vector<8x128xf32> -> vector<8x128xf32>
    %8 = vector.broadcast %3 : vector<1x128xf32> to vector<8x128xf32>
    %9 = arith.addf %7, %8 : vector<8x128xf32>
    %cst_13 = arith.constant 0.000000e+00 : f32
    %10 = vector.broadcast %cst_13 : f32 to vector<8x128xf32>
    %11 = arith.maximumf %9, %10 : vector<8x128xf32>
    %c0_14 = arith.constant 0 : index
    %c0_15 = arith.constant 0 : index
    %12 = vector.load %arg9[%c0_14, %c0_15] : memref<8x128xf32, #tpu.memory_space<vmem>>, vector<8x128xf32>
    tpu.vector_store %arg9[%c0_14, %c0_15], %11 {strides = array<i32>} : memref<8x128xf32, #tpu.memory_space<vmem>>, vector<8x128xf32>,
    %c0_16 = arith.constant 0 : index
    %c0_17 = arith.constant 0 : index
    %13 = vector.load %arg9[%c0_16, %c0_17] : memref<8x128xf32, #tpu.memory_space<vmem>>, vector<8x128xf32>
    %cst_18 = arith.constant dense<0.000000e+00> : vector<8x128xf32>
    %14 = tpu.matmul %13, %1, %cst_18 {dimension_numbers = #tpu.dot_dimension_numbers<[1], [0], [0], [1], [0, 0, 1, 1], [], []>} : vector<8x128xf32>, vector<128x128xf32>, vector<8x128xf32> -> vector<8x128xf32>
    %15 = vector.broadcast %4 : vector<1x128xf32> to vector<8x128xf32>
    %16 = arith.addf %14, %15 : vector<8x128xf32>
    %cst_19 = arith.constant 0.000000e+00 : f32
    %17 = vector.broadcast %cst_19 : f32 to vector<8x128xf32>
    %18 = arith.maximumf %16, %17 : vector<8x128xf32>
    %c0_20 = arith.constant 0 : index
    %c0_21 = arith.constant 0 : index
    %19 = vector.load %arg10[%c0_20, %c0_21] : memref<8x128xf32, #tpu.memory_space<vmem>>, vector<8x128xf32>
    tpu.vector_store %arg10[%c0_20, %c0_21], %18 {strides = array<i32>} : memref<8x128xf32, #tpu.memory_space<vmem>>, vector<8x128xf32>,
    %c0_22 = arith.constant 0 : index
    %c0_23 = arith.constant 0 : index
    %20 = vector.load %arg10[%c0_22, %c0_23] : memref<8x128xf32, #tpu.memory_space<vmem>>, vector<8x128xf32>
    %cst_24 = arith.constant dense<0.000000e+00> : vector<8x128xf32>
    %21 = tpu.matmul %20, %2, %cst_24 {dimension_numbers = #tpu.dot_dimension_numbers<[1], [0], [0], [1], [0, 0, 1, 1], [], []>} : vector<8x128xf32>, vector<128x128xf32>, vector<8x128xf32> -> vector<8x128xf32>
    %22 = vector.broadcast %5 : vector<1x128xf32> to vector<8x128xf32>
    %23 = arith.addf %21, %22 : vector<8x128xf32>
    %c0_25 = arith.constant 0 : index
    %c0_26 = arith.constant 0 : index
    %24 = vector.load %arg8[%c0_25, %c0_26] : memref<8x128xf32, #tpu.memory_space<vmem>>, vector<8x128xf32>
    tpu.vector_store %arg8[%c0_25, %c0_26], %23 {strides = array<i32>} : memref<8x128xf32, #tpu.memory_space<vmem>>, vector<8x128xf32>,
    return
  }
  func.func @transform_0(%arg0: i32) -> (i32, i32) {
    %c0_i32 = arith.constant 0 : i32
    %c0_i32_0 = arith.constant 0 : i32
    return %arg0, %c0_i32 : i32, i32
  }
  func.func @transform_1(%arg0: i32) -> (i32, i32) {
    %c0_i32 = arith.constant 0 : i32
    %c0_i32_0 = arith.constant 0 : i32
    %c0_i32_1 = arith.constant 0 : i32
    return %c0_i32, %c0_i32_0 : i32, i32
  }
  func.func @transform_2(%arg0: i32) -> (i32, i32) {
    %c0_i32 = arith.constant 0 : i32
    %c0_i32_0 = arith.constant 0 : i32
    %c0_i32_1 = arith.constant 0 : i32
    return %c0_i32, %c0_i32_0 : i32, i32
  }
  func.func @transform_3(%arg0: i32) -> (i32, i32) {
    %c0_i32 = arith.constant 0 : i32
    %c0_i32_0 = arith.constant 0 : i32
    %c0_i32_1 = arith.constant 0 : i32
    return %c0_i32, %c0_i32_0 : i32, i32
  }
  func.func @transform_4(%arg0: i32) -> (i32, i32) {
    %c0_i32 = arith.constant 0 : i32
    %c0_i32_0 = arith.constant 0 : i32
    %c0_i32_1 = arith.constant 0 : i32
    return %c0_i32, %c0_i32_0 : i32, i32
  }
  func.func @transform_5(%arg0: i32) -> (i32, i32) {
    %c0_i32 = arith.constant 0 : i32
    %c0_i32_0 = arith.constant 0 : i32
    %c0_i32_1 = arith.constant 0 : i32
    return %c0_i32, %c0_i32_0 : i32, i32
  }
  func.func @transform_6(%arg0: i32) -> (i32, i32) {
    %c0_i32 = arith.constant 0 : i32
    %c0_i32_0 = arith.constant 0 : i32
    %c0_i32_1 = arith.constant 0 : i32
    return %c0_i32, %c0_i32_0 : i32, i32
  }
  func.func @transform_7(%arg0: i32) -> (i32, i32) {
    %c0_i32 = arith.constant 0 : i32
    %c0_i32_0 = arith.constant 0 : i32
    return %arg0, %c0_i32 : i32, i32
  }
}

</mosaic_0001>

<bundles_post_ra>
// kernel: tpu_custom_call.1
= control target key start
LH: loop header
LB: loop body
LE: loop exit
PB: predicated region body
PF: predicated region fallthrough
CT: control target
= control target key end

     0   :  { %12 = vsyncpa [#allocation5], 0  ;;  %s901_s0 = inlined_call_operand.hbm [shape: f32[8,128], index: 0, kind: input, shape index: {}]   ;;  %s902_s1 = inlined_call_operand.hbm [shape: f32[128,128], index: 1, kind: input, shape index: {}]   ;;  %s903_s2 = inlined_call_operand.vmem [shape: f32[1,128], index: 2, kind: input, shape index: {}]   ;;  %s904_s3 = inlined_call_operand.hbm [shape: f32[128,128], index: 3, kind: input, shape index: {}]   ;;  %s905_s4 = inlined_call_operand.vmem [shape: f32[1,128], index: 4, kind: input, shape index: {}]   ;;  %s906_s5 = inlined_call_operand.hbm [shape: f32[128,128], index: 5, kind: input, shape index: {}]   ;;  %s907_s6 = inlined_call_operand.vmem [shape: f32[1,128], index: 6, kind: input, shape index: {}]   ;;  %s908_s7 = inlined_call_operand.hbm [shape: f32[8,128], index: 7, kind: output, shape index: {}]  }
   0x1   :  { %13 = vsyncpa [#allocation8], 0 }
   0x2   :  { %14 = vsyncpa [#allocation11], 0 }
   0x3   :  { %15 = vsyncpa [#allocation6], 0  ;;  %s743_s24 = smov [#allocation7]   ;;  %s625_s28 = scalar_lea.hbm %s902_s1, 2048 }
   0x4   :  { %s31_s25 = sshll.u32 %s743_s24, 4  ;;  %p626_p0 = scmp.ne.s32.totalorder %s902_s1, %s625_s28  ;;  %s32_s25 = int_to_ptr.vmem [resolvable:$true] %s31_s25 }
   0x5   :  { %p629_p1 = scmp.lt.u32.totalorder %s625_s28, %s902_s1 }
   0x7   :  { %p631_p2 = pnand %p629_p1, %p626_p0 }
   0x9   :  { %634 = shalt.err (!%p631_p2)
}
   0xa   :  { %s635_s10 = scalar_lea.vmem %s32_s25, 2048  ;;  %p640_p4 = scmp.lt.s32.totalorder %s32_s25, %s32_s25 }
   0xb   :  { %p636_p3 = scmp.ne.s32.totalorder %s32_s25, %s635_s10  ;;  %p641_p5 = scmp.lt.s32.totalorder %s635_s10, %s635_s10 }
   0xd   :  { %p642_p6 = por %p641_p5, %p640_p4 }
   0xf   :  { %p643_p7 = pnand %p642_p6, %p636_p3 }
  0x11   :  { %646 = shalt.err (!%p643_p7)
}
  0x12   :  { %s744_s11 = smov 128   ;;  %s745_s12 = smov 8  }
  0x13   :  { %37 = dma.hbm_to_vmem [thread:$0]  %s902_s1, 2048, %s32_s25, [#allocation8], %s744_s11, %s744_s11, %s745_s12  }
  0x14   :  { %s746_s15 = smov [#allocation4]   ;;  %s747_s17 = smov [#allocation9]  }
  0x15   :  { %s22_s16 = sshll.u32 %s746_s15, 4  ;;  %s45_s18 = sshll.u32 %s747_s17, 4  ;;  %s23_s16 = int_to_ptr.vmem [resolvable:$true] %s22_s16  ;;  %s46_s18 = int_to_ptr.vmem [resolvable:$true] %s45_s18 }
  0x16   :  { %s647_s21 = scalar_lea.hbm %s901_s0, 128 }
  0x17   :  { %p648_p8 = scmp.ne.s32.totalorder %s901_s0, %s647_s21  ;;  %p651_p9 = scmp.lt.u32.totalorder %s647_s21, %s901_s0 }
  0x19   :  { %p653_p10 = pnand %p651_p9, %p648_p8 }
  0x1b   :  { %656 = shalt.err (!%p653_p10)
}
  0x1c   :  { %s657_s1 = scalar_lea.vmem %s23_s16, 128  ;;  %p662_p12 = scmp.lt.s32.totalorder %s23_s16, %s23_s16 }
  0x1d   :  { %p658_p11 = scmp.ne.s32.totalorder %s23_s16, %s657_s1  ;;  %p663_p13 = scmp.lt.s32.totalorder %s657_s1, %s657_s1 }
  0x1f   :  { %p664_p0 = por %p663_p13, %p662_p12 }
  0x21   :  { %p665_p1 = pnand %p664_p0, %p658_p11 }
  0x23   :  { %668 = shalt.err (!%p665_p1)
}
  0x24   :  { %25 = dma.hbm_to_vmem [thread:$0]  %s901_s0, 128, %s23_s16, [#allocation5]  }
  0x25   :  { %s669_s30 = scalar_lea.hbm %s904_s3, 2048 }
  0x26   :  { %p670_p2 = scmp.ne.s32.totalorder %s904_s3, %s669_s30  ;;  %p673_p3 = scmp.lt.u32.totalorder %s669_s30, %s904_s3 }
  0x28   :  { %p675_p4 = pnand %p673_p3, %p670_p2 }
  0x2a   :  { %678 = shalt.err (!%p675_p4)
}
  0x2b   :  { %s679_s14 = scalar_lea.vmem %s46_s18, 2048  ;;  %p684_p6 = scmp.lt.s32.totalorder %s46_s18, %s46_s18 }
  0x2c   :  { %p680_p5 = scmp.ne.s32.totalorder %s46_s18, %s679_s14  ;;  %p685_p7 = scmp.lt.s32.totalorder %s679_s14, %s679_s14 }
  0x2e   :  { %p686_p8 = por %p685_p7, %p684_p6 }
  0x30   :  { %p687_p9 = pnand %p686_p8, %p680_p5 }
  0x32   :  { %690 = shalt.err (!%p687_p9)
}
  0x33   :  { %51 = dma.hbm_to_vmem [thread:$0]  %s904_s3, 2048, %s46_s18, [#allocation8], %s744_s11, %s744_s11, %s745_s12  }
  0x34   :  { %s748_s16 = smov [#allocation10]   ;;  %s691_s21 = scalar_lea.hbm %s906_s5, 2048 }
  0x35   :  { %s59_s17 = sshll.u32 %s748_s16, 4  ;;  %p692_p10 = scmp.ne.s32.totalorder %s906_s5, %s691_s21  ;;  %s60_s17 = int_to_ptr.vmem [resolvable:$true] %s59_s17 }
  0x36   :  { %p695_p11 = scmp.lt.u32.totalorder %s691_s21, %s906_s5 }
  0x38   :  { %p697_p12 = pnand %p695_p11, %p692_p10 }
  0x3a   :  { %700 = shalt.err (!%p697_p12)
}
  0x3b   :  { %s701_s1 = scalar_lea.vmem %s60_s17, 2048  ;;  %p706_p0 = scmp.lt.s32.totalorder %s60_s17, %s60_s17 }
  0x3c   :  { %p702_p13 = scmp.ne.s32.totalorder %s60_s17, %s701_s1  ;;  %p707_p1 = scmp.lt.s32.totalorder %s701_s1, %s701_s1 }
  0x3e   :  { %p708_p2 = por %p707_p1, %p706_p0 }
  0x40   :  { %p709_p3 = pnand %p708_p2, %p702_p13 }
  0x42   :  { %712 = shalt.err (!%p709_p3)
}
  0x43   :  { %65 = dma.hbm_to_vmem [thread:$0]  %s906_s5, 2048, %s60_s17, [#allocation11], %s744_s11, %s744_s11, %s745_s12  }
  0x44   :  { %735 = dma.done.wait [#allocation5], 128  }
  0x45   :  { %736 = vsyncadd [#allocation5], 4294967168 }
  0x46   :  { %737 = dma.done.wait [#allocation8], 4096  }
  0x47   :  { %738 = vsyncadd [#allocation8], 4294963200 }
  0x48   :  { %739 = dma.done.wait [#allocation11], 2048  }
  0x49   :  { %740 = vsyncadd [#allocation11], 4294965248  ;;  %v749_v0 = vmov 0.0|0.0   ;;  %vm750_vm0 = vmmov 0   ;;  %v751_v1 = vmov 0.0   ;;  %v80_v2 = vld [vmem:[#allocation7] sm:$0xff] }
  0x4a   :  { %543 = vmatprep.subr.bf16.mxu0 %v749_v0  ;;  %470 = vmatprep.mubr.msk.f32.mxu0 %vm750_vm0, %v751_v1  ;;  %v81_v3 = vld [vmem:[#allocation7 + $0x8] sm:$0xff]  ;;  %v82_v4 = vld [vmem:[#allocation7 + $0x10] sm:$0xff]  ;;  %v83_v6 = vld [vmem:[#allocation7 + $0x18] sm:$0xff]  ;;  %s752_s28 = smov [#allocation12]  }
  0x4b   :  { %567 = vmatprep.subr.bf16.mxu1 %v749_v0  ;;  %505 = vmatprep.mubr.msk.f32.mxu1 %vm750_vm0, %v751_v1  ;;  %v544_v5 = vpack.c.bf16 %v81_v3, %v80_v2  ;;  %v547_v7 = vpack.c.bf16 %v83_v6, %v82_v4  ;;  %v84_v8 = vld [vmem:[#allocation7 + $0x20] sm:$0xff]  ;;  %v85_v9 = vld [vmem:[#allocation7 + $0x28] sm:$0xff]  ;;  %v98_v12 = vld [vmem:[#allocation9 + $0x10] sm:$0xff]  ;;  %s373_s29 = sshll.u32 %s752_s28, 4  ;;  %s374_s29 = int_to_ptr.vmem [resolvable:$true] %s373_s29 }
  0x4c   :  { %v96_v10 = vld [vmem:[#allocation9] sm:$0xff]  ;;  %v97_v11 = vld [vmem:[#allocation9 + $0x8] sm:$0xff]  ;;  %v99_v13 = vld [vmem:[#allocation9 + $0x18] sm:$0xff]  ;;  %v550_v14 = vpack.c.bf16 %v85_v9, %v84_v8  ;;  %s713_s30 = scalar_lea.vmem %s374_s29, 128  ;;  %p718_p5 = scmp.lt.s32.totalorder %s374_s29, %s374_s29 }
  0x4d   :  { %545 = vmatpush3.bf16.msra.mxu0 %v544_v5  ;;  %v568_v15 = vpack.c.bf16 %v97_v11, %v96_v10  ;;  %v86_v16 = vld [vmem:[#allocation7 + $0x30] sm:$0xff]  ;;  %v87_v17 = vld [vmem:[#allocation7 + $0x38] sm:$0xff]  ;;  %v571_v18 = vpack.c.bf16 %v99_v13, %v98_v12  ;;  %v100_v19 = vld [vmem:[#allocation9 + $0x20] sm:$0xff]  ;;  %p714_p4 = scmp.ne.s32.totalorder %s374_s29, %s713_s30  ;;  %p719_p6 = scmp.lt.s32.totalorder %s713_s30, %s713_s30 }
  0x4e   :  { %546 = vmatprep.subr.bf16.mxu0 %v749_v0  ;;  %v101_v20 = vld [vmem:[#allocation9 + $0x28] sm:$0xff]  ;;  %v553_v21 = vpack.c.bf16 %v87_v17, %v86_v16  ;;  %v88_v22 = vld [vmem:[#allocation7 + $0x40] sm:$0xff]  ;;  %v102_v25 = vld [vmem:[#allocation9 + $0x30] sm:$0xff] }
  0x4f   :  { %569 = vmatpush3.bf16.msra.mxu1 %v568_v15  ;;  %v89_v23 = vld [vmem:[#allocation7 + $0x48] sm:$0xff]  ;;  %v574_v24 = vpack.c.bf16 %v101_v20, %v100_v19  ;;  %v103_v26 = vld [vmem:[#allocation9 + $0x38] sm:$0xff]  ;;  %v90_v28 = vld [vmem:[#allocation7 + $0x50] sm:$0xff]  ;;  %p720_p7 = por %p719_p6, %p718_p5 }
  0x50   :  { %570 = vmatprep.subr.bf16.mxu1 %v749_v0  ;;  %v556_v27 = vpack.c.bf16 %v89_v23, %v88_v22  ;;  %v91_v29 = vld [vmem:[#allocation7 + $0x58] sm:$0xff]  ;;  %v577_v30 = vpack.c.bf16 %v103_v26, %v102_v25  ;;  %v104_v31 = vld [vmem:[#allocation9 + $0x40] sm:$0xff]  ;;  %v105_v32 = vld [vmem:[#allocation9 + $0x48] sm:$0xff] }
  0x51   :  { %548 = vmatpush3.bf16.msra.mxu0 %v547_v7  ;;  %v559_v33 = vpack.c.bf16 %v91_v29, %v90_v28  ;;  %v92_v34 = vld [vmem:[#allocation7 + $0x60] sm:$0xff]  ;;  %v93_v35 = vld [vmem:[#allocation7 + $0x68] sm:$0xff]  ;;  %v580_v36 = vpack.c.bf16 %v105_v32, %v104_v31  ;;  %v106_v37 = vld [vmem:[#allocation9 + $0x50] sm:$0xff]  ;;  %p721_p8 = pnand %p720_p7, %p714_p4 }
  0x52   :  { %549 = vmatprep.subr.bf16.mxu0 %v749_v0  ;;  %v107_v38 = vld [vmem:[#allocation9 + $0x58] sm:$0xff]  ;;  %v562_v39 = vpack.c.bf16 %v93_v35, %v92_v34  ;;  %v94_v40 = vld [vmem:[#allocation7 + $0x70] sm:$0xff]  ;;  %v108_v43 = vld [vmem:[#allocation9 + $0x60] sm:$0xff] }
  0x53   :  { %572 = vmatpush3.bf16.msra.mxu1 %v571_v18  ;;  %v95_v41 = vld [vmem:[#allocation7 + $0x78] sm:$0xff]  ;;  %v583_v42 = vpack.c.bf16 %v107_v38, %v106_v37  ;;  %v109_v44 = vld [vmem:[#allocation9 + $0x68] sm:$0xff]  ;;  %v110_v48 = vld [vmem:[#allocation9 + $0x70] sm:$0xff] }
  0x54   :  { %573 = vmatprep.subr.bf16.mxu1 %v749_v0  ;;  %v565_v45 = vpack.c.bf16 %v95_v41, %v94_v40  ;;  %v586_v46 = vpack.c.bf16 %v109_v44, %v108_v43  ;;  %v131_v47 = vld [vmem:[#allocation4] sm:$0xff]  ;;  %v112_v51 = vld [vmem:[#allocation10] sm:$0xff]  ;;  %v113_v52 = vld [vmem:[#allocation10 + $0x8] sm:$0xff] }
  0x55   :  { %551 = vmatpush3.bf16.msra.mxu0 %v550_v14  ;;  %v111_v49 = vld [vmem:[#allocation9 + $0x78] sm:$0xff]  ;;  %v114_v53 = vld [vmem:[#allocation10 + $0x10] sm:$0xff]  ;;  %v592_v54 = vpack.c.bf16 %v113_v52, %v112_v51  ;;  %v116_v57 = vld [vmem:[#allocation10 + $0x20] sm:$0xff] }
  0x56   :  { %552 = vmatprep.subr.bf16.mxu0 %v749_v0  ;;  %v589_v50 = vpack.c.bf16 %v111_v49, %v110_v48  ;;  %v115_v55 = vld [vmem:[#allocation10 + $0x18] sm:$0xff]  ;;  %v117_v58 = vld [vmem:[#allocation10 + $0x28] sm:$0xff]  ;;  %v118_v60 = vld [vmem:[#allocation10 + $0x30] sm:$0xff] }
  0x57   :  { %575 = vmatpush3.bf16.msra.mxu1 %v574_v24  ;;  %v595_v56 = vpack.c.bf16 %v115_v55, %v114_v53  ;;  %v598_v59 = vpack.c.bf16 %v117_v58, %v116_v57  ;;  %v119_v61 = vld [vmem:[#allocation10 + $0x38] sm:$0xff]  ;;  %v120_v63 = vld [vmem:[#allocation10 + $0x40] sm:$0xff]  ;;  %v122_v3 = vld [vmem:[#allocation10 + $0x50] sm:$0xff] }
  0x58   :  { %576 = vmatprep.subr.bf16.mxu1 %v749_v0  ;;  %v601_v62 = vpack.c.bf16 %v119_v61, %v118_v60  ;;  %v123_v4 = vld [vmem:[#allocation10 + $0x58] sm:$0xff]  ;;  %v124_v6 = vld [vmem:[#allocation10 + $0x60] sm:$0xff]  ;;  %v125_v7 = vld [vmem:[#allocation10 + $0x68] sm:$0xff] }
  0x59   :  { %554 = vmatpush3.bf16.msra.mxu0 %v553_v21  ;;  %v607_v5 = vpack.c.bf16 %v123_v4, %v122_v3  ;;  %v610_v8 = vpack.c.bf16 %v125_v7, %v124_v6  ;;  %v384_v9 = vld [vmem:[%s903_s2] ss:$0 sm:$0xff]  ;;  %v126_v14 = vld [vmem:[#allocation10 + $0x70] sm:$0xff] }
  0x5a   :  { %555 = vmatprep.subr.bf16.mxu0 %v749_v0  ;;  %v127_v15 = vld [vmem:[#allocation10 + $0x78] sm:$0xff] }
  0x5b   :  { %578 = vmatpush3.bf16.msra.mxu1 %v577_v30  ;;  %v613_v16 = vpack.c.bf16 %v127_v15, %v126_v14  ;;  %v385_v17 = vld [vmem:[%s905_s4] ss:$0 sm:$0xff] }
  0x5c   :  { %579 = vmatprep.subr.bf16.mxu1 %v749_v0  ;;  %v386_v21 = vld [vmem:[%s907_s6] ss:$0 sm:$0xff] }
  0x5d   :  { %557 = vmatpush3.bf16.msra.mxu0 %v556_v27 }
  0x5e   :  { %558 = vmatprep.subr.bf16.mxu0 %v749_v0 }
  0x5f   :  { %581 = vmatpush3.bf16.msra.mxu1 %v580_v36 }
  0x60   :  { %582 = vmatprep.subr.bf16.mxu1 %v749_v0 }
  0x61   :  { %560 = vmatpush3.bf16.msra.mxu0 %v559_v33 }
  0x62   :  { %561 = vmatprep.subr.bf16.mxu0 %v749_v0 }
  0x63   :  { %584 = vmatpush3.bf16.msra.mxu1 %v583_v42 }
  0x64   :  { %585 = vmatprep.subr.bf16.mxu1 %v749_v0 }
  0x65   :  { %563 = vmatpush3.bf16.msra.mxu0 %v562_v39 }
  0x66   :  { %564 = vmatprep.subr.bf16.mxu0 %v749_v0 }
  0x67   :  { %587 = vmatpush3.bf16.msra.mxu1 %v586_v46 }
  0x68   :  { %588 = vmatprep.subr.bf16.mxu1 %v749_v0 }
  0x69   :  { %566 = vmatpush3.bf16.msra.mxu0 %v565_v45 }
  0x6a   :  { %591 = vmatprep.subr.bf16.mxu0 %v749_v0 }
  0x6b   :  { %590 = vmatpush3.bf16.msra.mxu1 %v589_v50 }
  0x6c   :  { %471 = vmatmul.mubr.f32.vlgmr.msra.gmra.mrb[0].mxu0 %v131_v47 }
  0x6d   :  { %540 = vmatprep.mubr.msk.f32.mxu0 %vm750_vm0, %v751_v1  ;;  %593 = vmatpush3.bf16.msra.mxu0 %v592_v54  ;;  %v121_v1 = vld [vmem:[#allocation10 + $0x48] sm:$0xff] }
  0x6e   :  { %594 = vmatprep.subr.bf16.mxu0 %v749_v0  ;;  %v604_v2 = vpack.c.bf16 %v121_v1, %v120_v63 }
  0x71   :  { %596 = vmatpush3.bf16.msra.mxu0 %v595_v56 }
  0x72   :  { %597 = vmatprep.subr.bf16.mxu0 %v749_v0 }
  0x75   :  { %599 = vmatpush3.bf16.msra.mxu0 %v598_v59 }
  0x76   :  { %600 = vmatprep.subr.bf16.mxu0 %v749_v0 }
  0x79   :  { %602 = vmatpush3.bf16.msra.mxu0 %v601_v62 }
  0x7a   :  { %603 = vmatprep.subr.bf16.mxu0 %v749_v0 }
  0x7d   :  { %605 = vmatpush3.bf16.msra.mxu0 %v604_v2 }
  0x7e   :  { %606 = vmatprep.subr.bf16.mxu0 %v749_v0 }
  0x81   :  { %608 = vmatpush3.bf16.msra.mxu0 %v607_v5 }
  0x82   :  { %609 = vmatprep.subr.bf16.mxu0 %v749_v0 }
  0x85   :  { %611 = vmatpush3.bf16.msra.mxu0 %v610_v8 }
  0x86   :  { %612 = vmatprep.subr.bf16.mxu0 %v749_v0 }
  0x89   :  { %614 = vmatpush3.bf16.msra.mxu0 %v613_v16 }
 0x13f   :  { %v204_v10 = vpop.f32.mrb[0].mxu0 }
 0x140   :  { %v205_v11 = vadd.f32 %v384_v9, %v204_v10  ;;  %v472_v12 = vpop.f32.mrb[1].mxu0 }
 0x142   :  { %v208_v13 = vmax.f32 %v205_v11, 0.0 }
 0x144   :  { %506 = vmatmul.mubr.f32.vlgmr.msra.gmra.mrb[0].mxu1 %v208_v13 }
 0x217   :  { %v283_v18 = vpop.f32.mrb[0].mxu1 }
 0x218   :  { %v284_v19 = vadd.f32 %v385_v17, %v283_v18  ;;  %v507_v0 = vpop.f32.mrb[1].mxu1 }
 0x21a   :  { %v287_v20 = vmax.f32 %v284_v19, 0.0 }
 0x21c   :  { %541 = vmatmul.mubr.f32.vlgmr.msra.gmra.mrb[2].mxu0 %v287_v20 }
 0x2ef   :  { %v362_v22 = vpop.f32.mrb[2].mxu0 }
 0x2f0   :  { %v363_v23 = vadd.f32 %v386_v21, %v362_v22  ;;  %v542_v24 = vpop.f32.mrb[3].mxu0 }
 0x2f2   :  { %366 = vst [vmem:[#allocation12] sm:$0xff] %v363_v23 }
 0x2f3   :  { %724 = shalt.err (!%p721_p8)
}
 0x2f4   :  { %s725_s9 = scalar_lea.hbm %s908_s7, 128 }
 0x2f5   :  { %p726_p9 = scmp.ne.s32.totalorder %s908_s7, %s725_s9  ;;  %p729_p10 = scmp.lt.u32.totalorder %s725_s9, %s908_s7 }
 0x2f7   :  { %p731_p11 = pnand %p729_p10, %p726_p9 }
 0x2f9   :  { %734 = shalt.err (!%p731_p11)
}
 0x2fa   :  { %376 = dma.vmem_to_hbm [thread:$0]  %s374_s29, 128, %s908_s7, [#allocation6]  }
 0x2fb   :  { %741 = dma.done.wait [#allocation6], 128  }
 0x2fc   :  { %742 = vsyncadd [#allocation6], 4294967168 }
 0x2fd   :  { %380 = vsyncpa [#allocation5], 1 }
 0x2fe   :  { %381 = vsyncpa [#allocation8], 1 }
 0x2ff   :  { %382 = vsyncpa [#allocation11], 1 }
 0x300   :  { %383 = vsyncpa [#allocation6], 1 }

</bundles_post_ra>
